<compile_context>
chip_gen: v7x
topology: tpu7x:2x2x1
jax: 0.10.0
libtpu: 0.0.40
codegen_flags: <defaults>
</compile_context>

<pallas_src>
import math
import functools

import jax
import jax.numpy as jnp
from jax import lax
from jax.experimental import pallas as pl
from jax.experimental.pallas import tpu as pltpu


def _fused_self_attention_kernel(x_ref, wq_ref, bq_ref, wk_ref, bk_ref,
                                 wv_ref, bv_ref, wo_ref, bo_ref,
                                 o_ref,
                                 q_s, k_s, v_s, acc_ref,
                                 *, n_heads, tq):
    """One grid step = one (batch, head) pair."""
    h = pl.program_id(1)

    # Zero the out_proj accumulator at the first head of each batch element.
    @pl.when(h == 0)
    def _():
        acc_ref[...] = jnp.zeros_like(acc_ref)

    xb = x_ref[0]                                   # (S, D), bf16

    # Per-head projections (exact slices of in_proj; scale already folded
    # into wq/bq on the host).  bf16 operands, f32 accumulation.
    q_s[...] = (jnp.dot(xb, wq_ref[0], preferred_element_type=jnp.float32)
                + bq_ref[0]).astype(q_s.dtype)      # (S, dh_pad)
    k_s[...] = (jnp.dot(xb, wk_ref[0], preferred_element_type=jnp.float32)
                + bk_ref[0]).astype(k_s.dtype)      # (S, dh_pad)
    v_s[...] = (jnp.dot(xb, wv_ref[0], preferred_element_type=jnp.float32)
                + bv_ref[0]).astype(v_s.dtype)      # (S, dh_pad)

    wo_h = wo_ref[0]                                # (dh_pad, D), bf16
    n_chunks = q_s.shape[0] // tq

    def q_chunk(i, carry):
        row0 = pl.multiple_of(i * tq, tq)
        qi = q_s[pl.ds(row0, tq), :]                # (tq, dh_pad) bf16
        k_all = k_s[...]                            # (S, dh_pad) bf16
        v_all = v_s[...]                            # (S, dh_pad) bf16

        # scores: contract last dims directly (no explicit transpose).
        s = lax.dot_general(qi, k_all, (((1,), (1,)), ((), ())),
                            preferred_element_type=jnp.float32)   # (tq, S)
        s = s - jnp.max(s, axis=-1, keepdims=True)
        p = jnp.exp(s)
        denom = jnp.sum(p, axis=-1, keepdims=True)                # (tq, 1)

        # Unnormalized PV, then cheap deferred normalization on the small
        # (tq, dh_pad) tile via the EUP reciprocal.
        o = jnp.dot(p.astype(v_all.dtype), v_all,
                    preferred_element_type=jnp.float32)           # (tq, dh_pad)
        o = o * pl.reciprocal(denom, approx=True)

        # Per-head out_proj partial, accumulated across heads.
        partial = jnp.dot(o.astype(wo_h.dtype), wo_h,
                          preferred_element_type=jnp.float32)     # (tq, D)
        acc_ref[pl.ds(row0, tq), :] = acc_ref[pl.ds(row0, tq), :] + partial
        return carry

    lax.fori_loop(0, n_chunks, q_chunk, 0, unroll=n_chunks <= 4)

    # Finalize: add out_proj bias and emit on the last head.
    @pl.when(h == n_heads - 1)
    def _():
        o_ref[0] = (acc_ref[...] + bo_ref[...]).astype(o_ref.dtype)


def prepare_params(w_in, b_in, w_out, b_out, n_heads, compute_dtype=jnp.bfloat16):
    """One-time host-side re-layout of the PyTorch Linear parameters.

    w_in:  (3D, D)  PyTorch layout (out, in); rows [0:D]=k, [D:2D]=v, [2D:3D]=q
    w_out: (D, D)   PyTorch layout (out, in)
    Returns head-major, 128-lane-padded, pre-transposed (and pre-scaled for q)
    weights so the kernel does plain x @ W with lane-dense per-head tiles.
    """
    three_d, D = w_in.shape
    assert three_d == 3 * D and D % n_heads == 0
    d_head = D // n_heads
    dh_pad = ((d_head + 127) // 128) * 128
    scale = 1.0 / math.sqrt(d_head)

    def split_heads(w_rows, b_rows, s=1.0):
        w = w_rows.reshape(n_heads, d_head, D)                 # (H, dh, D)
        w = jnp.transpose(w, (0, 2, 1)) * s                    # (H, D, dh)
        w = jnp.pad(w, ((0, 0), (0, 0), (0, dh_pad - d_head)))
        b = b_rows.reshape(n_heads, 1, d_head) * s
        b = jnp.pad(b, ((0, 0), (0, 0), (0, dh_pad - d_head)))
        return w.astype(compute_dtype), b.astype(jnp.float32)

    # PyTorch chunk(3) order: k, v, q.  Fold 1/sqrt(d_head) into q's W and b.
    wk, bk = split_heads(w_in[0 * D:1 * D], b_in[0 * D:1 * D])
    wv, bv = split_heads(w_in[1 * D:2 * D], b_in[1 * D:2 * D])
    wq, bq = split_heads(w_in[2 * D:3 * D], b_in[2 * D:3 * D], scale)

    # out_proj: out = concat_h(attn_h) @ w_out.T + b_out
    #         = sum_h attn_h @ (w_out.T rows of head h)
    wo = w_out.T.reshape(n_heads, d_head, D)                   # (H, dh, D)
    wo = jnp.pad(wo, ((0, 0), (0, dh_pad - d_head), (0, 0))).astype(compute_dtype)
    bo = b_out.reshape(1, D).astype(jnp.float32)

    return dict(wq=wq, bq=bq, wk=wk, bk=bk, wv=wv, bv=bv, wo=wo, bo=bo,
                n_heads=n_heads, d_head=d_head, dh_pad=dh_pad)


def _vmem_limit_bytes(S, D, dh_pad):
    bf16, f32 = 2, 4
    weights = 2 * (3 * D * dh_pad + dh_pad * D) * bf16   # double-buffered per-head weights
    x_blk = 2 * S * D * bf16                             # double-buffered x block
    out_blk = 2 * S * D * f32                            # double-buffered output block
    scratch = 3 * S * dh_pad * bf16 + S * D * f32        # q/k/v scratch + accumulator
    est = weights + x_blk + out_blk + scratch + (4 << 20)
    # Keep within every generation's scoped budget (v7x physical = 64 MiB).
    return int(min(max(2 * est, 32 << 20), 48 << 20))


def self_attention(x, params):
    """x: (B, S, D) float32. params: output of prepare_params()."""
    B, S, D = x.shape
    n_heads = params["n_heads"]
    dh_pad = params["dh_pad"]

    # Query-chunk size for the in-kernel flash-style loop.
    tq = S if S <= 256 else 256
    assert S % tq == 0, "sequence length must be divisible by the query tile"

    kernel = functools.partial(_fused_self_attention_kernel,
                               n_heads=n_heads, tq=tq)

    # bf16 operands for all matmuls (accumulation stays f32 in-kernel).
    x_bf16 = x.astype(jnp.bfloat16)

    return pl.pallas_call(
        kernel,
        out_shape=jax.ShapeDtypeStruct((B, S, D), x.dtype),
        grid_spec=pltpu.PrefetchScalarGridSpec(
            num_scalar_prefetch=0,
            grid=(B, n_heads),                     # heads last = reduction axis
            in_specs=[
                pl.BlockSpec((1, S, D), lambda b, h: (b, 0, 0)),         # x
                pl.BlockSpec((1, D, dh_pad), lambda b, h: (h, 0, 0)),    # Wq (scaled)
                pl.BlockSpec((1, 1, dh_pad), lambda b, h: (h, 0, 0)),    # bq (scaled)
                pl.BlockSpec((1, D, dh_pad), lambda b, h: (h, 0, 0)),    # Wk
                pl.BlockSpec((1, 1, dh_pad), lambda b, h: (h, 0, 0)),    # bk
                pl.BlockSpec((1, D, dh_pad), lambda b, h: (h, 0, 0)),    # Wv
                pl.BlockSpec((1, 1, dh_pad), lambda b, h: (h, 0, 0)),    # bv
                pl.BlockSpec((1, dh_pad, D), lambda b, h: (h, 0, 0)),    # Wout (per head)
                pl.BlockSpec((1, D), lambda b, h: (0, 0)),               # b_out
            ],
            out_specs=pl.BlockSpec((1, S, D), lambda b, h: (b, 0, 0)),
            scratch_shapes=[
                pltpu.VMEM((S, dh_pad), jnp.bfloat16),   # q (head-major, lane-dense)
                pltpu.VMEM((S, dh_pad), jnp.bfloat16),   # k
                pltpu.VMEM((S, dh_pad), jnp.bfloat16),   # v
                pltpu.VMEM((S, D), jnp.float32),         # out_proj accumulator
            ],
        ),
        compiler_params=pltpu.CompilerParams(
            dimension_semantics=("parallel", "arbitrary"),
            vmem_limit_bytes=_vmem_limit_bytes(S, D, dh_pad),
        ),
    )(x_bf16, params["wq"], params["bq"], params["wk"], params["bk"],
      params["wv"], params["bv"], params["wo"], params["bo"])


def self_attention_reference(x, w_in, b_in, w_out, b_out, n_heads):
    """Pure-JAX fp32 mirror of the PyTorch forward (casual_mask=False path)."""
    B, S, D = x.shape
    dh = D // n_heads
    proj = x @ w_in.T + b_in
    k, v, q = jnp.split(proj, 3, axis=-1)

    def to_heads(t):
        return t.reshape(B, S, n_heads, dh).transpose(0, 2, 1, 3)

    q, k, v = to_heads(q), to_heads(k), to_heads(v)
    w = jnp.einsum('bhqd,bhkd->bhqk', q, k) / math.sqrt(dh)
    w = jax.nn.softmax(w, axis=-1)
    o = jnp.einsum('bhqk,bhkd->bhqd', w, v)
    o = o.transpose(0, 2, 1, 3).reshape(B, S, D)
    return o @ w_out.T + b_out


if __name__ == "__main__":
    # Small shapes consistent with the module: (B, S, D) with D % n_heads == 0.
    B, S, D, n_heads = 2, 8, 32, 4

    key = jax.random.PRNGKey(0)
    kx, kwi, kbi, kwo, kbo = jax.random.split(key, 5)

    x = jax.random.normal(kx, (B, S, D), dtype=jnp.float32)
    # PyTorch Linear layout: (out, in).
    w_in = 0.05 * jax.random.normal(kwi, (3 * D, D), dtype=jnp.float32)
    b_in = 0.05 * jax.random.normal(kbi, (3 * D,), dtype=jnp.float32)
    w_out = 0.05 * jax.random.normal(kwo, (D, D), dtype=jnp.float32)
    b_out = 0.05 * jax.random.normal(kbo, (D,), dtype=jnp.float32)

    # One-time parameter re-layout (hoisted out of the per-call path).
    params = prepare_params(w_in, b_in, w_out, b_out, n_heads)

    out = self_attention(x, params)
    out = jax.block_until_ready(out)

    ref = self_attention_reference(x, w_in, b_in, w_out, b_out, n_heads)
    assert out.shape == (B, S, D) and out.dtype == jnp.float32
    max_err = float(jnp.max(jnp.abs(out - ref)))
    assert jnp.allclose(out, ref, atol=3e-2, rtol=3e-2), f"max abs err {max_err}"

    print("KERNEL_OK")
</pallas_src>

<mosaic_0001>
module attributes {stable_mosaic.version = 11 : i64} {
  func.func @_fused_self_attention_kernel(%arg0: i32, %arg1: i32, %arg2: memref<1x8x32xbf16, #tpu.memory_space<vmem>>, %arg3: memref<1x32x128xbf16, #tpu.memory_space<vmem>>, %arg4: memref<1x1x128xf32, #tpu.memory_space<vmem>>, %arg5: memref<1x32x128xbf16, #tpu.memory_space<vmem>>, %arg6: memref<1x1x128xf32, #tpu.memory_space<vmem>>, %arg7: memref<1x32x128xbf16, #tpu.memory_space<vmem>>, %arg8: memref<1x1x128xf32, #tpu.memory_space<vmem>>, %arg9: memref<1x128x32xbf16, #tpu.memory_space<vmem>>, %arg10: memref<1x32xf32, #tpu.memory_space<vmem>>, %arg11: memref<1x8x32xf32, #tpu.memory_space<vmem>>, %arg12: memref<8x128xbf16, #tpu.memory_space<vmem>>, %arg13: memref<8x128xbf16, #tpu.memory_space<vmem>>, %arg14: memref<8x128xbf16, #tpu.memory_space<vmem>>, %arg15: memref<8x32xf32, #tpu.memory_space<vmem>>) attributes {dimension_semantics = [#tpu.dimension_semantics<parallel>, #tpu.dimension_semantics<arbitrary>], iteration_bounds = array<i64: 2, 4>, scalar_prefetch = 0 : i64, scratch_operands = 4 : i64, tpu.core_type = #tpu.core_type<tc>, window_params = [{transform_indices = @transform_0, window_bounds = array<i64: 1, 8, 32>}, {transform_indices = @transform_1, window_bounds = array<i64: 1, 32, 128>}, {transform_indices = @transform_2, window_bounds = array<i64: 1, 1, 128>}, {transform_indices = @transform_3, window_bounds = array<i64: 1, 32, 128>}, {transform_indices = @transform_4, window_bounds = array<i64: 1, 1, 128>}, {transform_indices = @transform_5, window_bounds = array<i64: 1, 32, 128>}, {transform_indices = @transform_6, window_bounds = array<i64: 1, 1, 128>}, {transform_indices = @transform_7, window_bounds = array<i64: 1, 128, 32>}, {pipeline_mode = #tpu.pipeline_mode<synchronous>, transform_indices = @transform_8, window_bounds = array<i64: 1, 32>}, {transform_indices = @transform_9, window_bounds = array<i64: 1, 8, 32>}]} {
    %c0_i32 = arith.constant 0 : i32
    %0 = arith.cmpi eq, %arg1, %c0_i32 : i32
    %1 = arith.extui %0 : i1 to i32
    %c0_i32_0 = arith.constant 0 : i32
    %2 = arith.cmpi ne, %1, %c0_i32_0 : i32
    scf.if %2 {
      %cst_46 = arith.constant 0.000000e+00 : f32
      %63 = vector.broadcast %cst_46 : f32 to vector<8x32xf32>
      %c0_47 = arith.constant 0 : index
      %c0_48 = arith.constant 0 : index
      %64 = vector.load %arg15[%c0_47, %c0_48] : memref<8x32xf32, #tpu.memory_space<vmem>>, vector<8x32xf32>
      tpu.vector_store %arg15[%c0_47, %c0_48], %63 {strides = array<i32>} : memref<8x32xf32, #tpu.memory_space<vmem>>, vector<8x32xf32>,
    } else {
    }
    %c0 = arith.constant 0 : index
    %c0_1 = arith.constant 0 : index
    %c0_2 = arith.constant 0 : index
    %3 = vector.load %arg2[%c0, %c0_1, %c0_2] : memref<1x8x32xbf16, #tpu.memory_space<vmem>>, vector<1x8x32xbf16>
    %4 = vector.shape_cast %3 : vector<1x8x32xbf16> to vector<8x32xbf16>
    %c0_3 = arith.constant 0 : index
    %c0_4 = arith.constant 0 : index
    %c0_5 = arith.constant 0 : index
    %5 = vector.load %arg3[%c0_3, %c0_4, %c0_5] : memref<1x32x128xbf16, #tpu.memory_space<vmem>>, vector<1x32x128xbf16>
    %6 = vector.shape_cast %5 : vector<1x32x128xbf16> to vector<32x128xbf16>
    %cst = arith.constant dense<0.000000e+00> : vector<8x128xf32>
    %7 = tpu.matmul %4, %6, %cst {dimension_numbers = #tpu.dot_dimension_numbers<[1], [0], [0], [1], [0, 0, 1, 1], [], []>} : vector<8x32xbf16>, vector<32x128xbf16>, vector<8x128xf32> -> vector<8x128xf32>
    %c0_6 = arith.constant 0 : index
    %c0_7 = arith.constant 0 : index
    %c0_8 = arith.constant 0 : index
    %8 = vector.load %arg4[%c0_6, %c0_7, %c0_8] : memref<1x1x128xf32, #tpu.memory_space<vmem>>, vector<1x1x128xf32>
    %9 = vector.shape_cast %8 : vector<1x1x128xf32> to vector<1x128xf32>
    %10 = vector.broadcast %9 : vector<1x128xf32> to vector<8x128xf32>
    %11 = arith.addf %7, %10 : vector<8x128xf32>
    %12 = arith.truncf %11 : vector<8x128xf32> to vector<8x128xbf16>
    %c0_9 = arith.constant 0 : index
    %c0_10 = arith.constant 0 : index
    %13 = vector.load %arg12[%c0_9, %c0_10] : memref<8x128xbf16, #tpu.memory_space<vmem>>, vector<8x128xbf16>
    tpu.vector_store %arg12[%c0_9, %c0_10], %12 {strides = array<i32>} : memref<8x128xbf16, #tpu.memory_space<vmem>>, vector<8x128xbf16>,
    %c0_11 = arith.constant 0 : index
    %c0_12 = arith.constant 0 : index
    %c0_13 = arith.constant 0 : index
    %14 = vector.load %arg5[%c0_11, %c0_12, %c0_13] : memref<1x32x128xbf16, #tpu.memory_space<vmem>>, vector<1x32x128xbf16>
    %15 = vector.shape_cast %14 : vector<1x32x128xbf16> to vector<32x128xbf16>
    %cst_14 = arith.constant dense<0.000000e+00> : vector<8x128xf32>
    %16 = tpu.matmul %4, %15, %cst_14 {dimension_numbers = #tpu.dot_dimension_numbers<[1], [0], [0], [1], [0, 0, 1, 1], [], []>} : vector<8x32xbf16>, vector<32x128xbf16>, vector<8x128xf32> -> vector<8x128xf32>
    %c0_15 = arith.constant 0 : index
    %c0_16 = arith.constant 0 : index
    %c0_17 = arith.constant 0 : index
    %17 = vector.load %arg6[%c0_15, %c0_16, %c0_17] : memref<1x1x128xf32, #tpu.memory_space<vmem>>, vector<1x1x128xf32>
    %18 = vector.shape_cast %17 : vector<1x1x128xf32> to vector<1x128xf32>
    %19 = vector.broadcast %18 : vector<1x128xf32> to vector<8x128xf32>
    %20 = arith.addf %16, %19 : vector<8x128xf32>
    %21 = arith.truncf %20 : vector<8x128xf32> to vector<8x128xbf16>
    %c0_18 = arith.constant 0 : index
    %c0_19 = arith.constant 0 : index
    %22 = vector.load %arg13[%c0_18, %c0_19] : memref<8x128xbf16, #tpu.memory_space<vmem>>, vector<8x128xbf16>
    tpu.vector_store %arg13[%c0_18, %c0_19], %21 {strides = array<i32>} : memref<8x128xbf16, #tpu.memory_space<vmem>>, vector<8x128xbf16>,
    %c0_20 = arith.constant 0 : index
    %c0_21 = arith.constant 0 : index
    %c0_22 = arith.constant 0 : index
    %23 = vector.load %arg7[%c0_20, %c0_21, %c0_22] : memref<1x32x128xbf16, #tpu.memory_space<vmem>>, vector<1x32x128xbf16>
    %24 = vector.shape_cast %23 : vector<1x32x128xbf16> to vector<32x128xbf16>
    %cst_23 = arith.constant dense<0.000000e+00> : vector<8x128xf32>
    %25 = tpu.matmul %4, %24, %cst_23 {dimension_numbers = #tpu.dot_dimension_numbers<[1], [0], [0], [1], [0, 0, 1, 1], [], []>} : vector<8x32xbf16>, vector<32x128xbf16>, vector<8x128xf32> -> vector<8x128xf32>
    %c0_24 = arith.constant 0 : index
    %c0_25 = arith.constant 0 : index
    %c0_26 = arith.constant 0 : index
    %26 = vector.load %arg8[%c0_24, %c0_25, %c0_26] : memref<1x1x128xf32, #tpu.memory_space<vmem>>, vector<1x1x128xf32>
    %27 = vector.shape_cast %26 : vector<1x1x128xf32> to vector<1x128xf32>
    %28 = vector.broadcast %27 : vector<1x128xf32> to vector<8x128xf32>
    %29 = arith.addf %25, %28 : vector<8x128xf32>
    %30 = arith.truncf %29 : vector<8x128xf32> to vector<8x128xbf16>
    %c0_27 = arith.constant 0 : index
    %c0_28 = arith.constant 0 : index
    %31 = vector.load %arg14[%c0_27, %c0_28] : memref<8x128xbf16, #tpu.memory_space<vmem>>, vector<8x128xbf16>
    tpu.vector_store %arg14[%c0_27, %c0_28], %30 {strides = array<i32>} : memref<8x128xbf16, #tpu.memory_space<vmem>>, vector<8x128xbf16>,
    %c0_29 = arith.constant 0 : index
    %c0_30 = arith.constant 0 : index
    %c0_31 = arith.constant 0 : index
    %32 = vector.load %arg9[%c0_29, %c0_30, %c0_31] : memref<1x128x32xbf16, #tpu.memory_space<vmem>>, vector<1x128x32xbf16>
    %33 = vector.shape_cast %32 : vector<1x128x32xbf16> to vector<128x32xbf16>
    %c0_i32_32 = arith.constant 0 : i32
    %c8_i32 = arith.constant 8 : i32
    %34 = arith.muli %c0_i32_32, %c8_i32 : i32
    %35 = tpu.assume_multiple %34, 8 : i32
    %36 = arith.index_cast %35 : i32 to index
    %c0_33 = arith.constant 0 : index
    %37 = vector.load %arg12[%36, %c0_33] : memref<8x128xbf16, #tpu.memory_space<vmem>>, vector<8x128xbf16>
    %c0_34 = arith.constant 0 : index
    %c0_35 = arith.constant 0 : index
    %38 = vector.load %arg13[%c0_34, %c0_35] : memref<8x128xbf16, #tpu.memory_space<vmem>>, vector<8x128xbf16>
    %c0_36 = arith.constant 0 : index
    %c0_37 = arith.constant 0 : index
    %39 = vector.load %arg14[%c0_36, %c0_37] : memref<8x128xbf16, #tpu.memory_space<vmem>>, vector<8x128xbf16>
    %cst_38 = arith.constant dense<0.000000e+00> : vector<8x8xf32>
    %40 = tpu.matmul %37, %38, %cst_38 {dimension_numbers = #tpu.dot_dimension_numbers<[1], [1], [0], [0], [0, 0, 1, 0], [], []>} : vector<8x128xbf16>, vector<8x128xbf16>, vector<8x8xf32> -> vector<8x8xf32>
    %cst_39 = arith.constant dense<0xFF800000> : vector<8xf32>
    %41 = vector.multi_reduction <maximumf>, %40, %cst_39 [1] : vector<8x8xf32> to vector<8xf32>
    %42 = vector.shape_cast %41 : vector<8xf32> to vector<8x1xf32>
    %43 = vector.broadcast %42 : vector<8x1xf32> to vector<8x8xf32>
    %44 = arith.subf %40, %43 : vector<8x8xf32>
    %45 = math.exp %44 : vector<8x8xf32>
    %cst_40 = arith.constant dense<0.000000e+00> : vector<8xf32>
    %46 = vector.multi_reduction <add>, %45, %cst_40 [1] : vector<8x8xf32> to vector<8xf32>
    %47 = vector.shape_cast %46 : vector<8xf32> to vector<8x1xf32>
    %48 = arith.truncf %45 : vector<8x8xf32> to vector<8x8xbf16>
    %cst_41 = arith.constant dense<0.000000e+00> : vector<8x128xf32>
    %49 = tpu.matmul %48, %39, %cst_41 {dimension_numbers = #tpu.dot_dimension_numbers<[1], [0], [0], [1], [0, 0, 1, 1], [], []>} : vector<8x8xbf16>, vector<8x128xbf16>, vector<8x128xf32> -> vector<8x128xf32>
    %50 = tpu.reciprocal %47 {approx = true} : vector<8x1xf32> -> vector<8x1xf32>
    %51 = vector.broadcast %50 : vector<8x1xf32> to vector<8x128xf32>
    %52 = arith.mulf %49, %51 : vector<8x128xf32>
    %53 = arith.truncf %52 : vector<8x128xf32> to vector<8x128xbf16>
    %cst_42 = arith.constant dense<0.000000e+00> : vector<8x32xf32>
    %54 = tpu.matmul %53, %33, %cst_42 {dimension_numbers = #tpu.dot_dimension_numbers<[1], [0], [0], [1], [0, 0, 1, 1], [], []>} : vector<8x128xbf16>, vector<128x32xbf16>, vector<8x32xf32> -> vector<8x32xf32>
    %55 = arith.index_cast %35 : i32 to index
    %c0_43 = arith.constant 0 : index
    %56 = vector.load %arg15[%55, %c0_43] : memref<8x32xf32, #tpu.memory_space<vmem>>, vector<8x32xf32>
    %57 = arith.addf %56, %54 : vector<8x32xf32>
    %58 = arith.index_cast %35 : i32 to index
    %c0_44 = arith.constant 0 : index
    %59 = vector.load %arg15[%58, %c0_44] : memref<8x32xf32, #tpu.memory_space<vmem>>, vector<8x32xf32>
    tpu.vector_store %arg15[%58, %c0_44], %57 {strides = array<i32>} : memref<8x32xf32, #tpu.memory_space<vmem>>, vector<8x32xf32>,
    %c1_i32 = arith.constant 1 : i32
    %c3_i32 = arith.constant 3 : i32
    %60 = arith.cmpi eq, %arg1, %c3_i32 : i32
    %61 = arith.extui %60 : i1 to i32
    %c0_i32_45 = arith.constant 0 : i32
    %62 = arith.cmpi ne, %61, %c0_i32_45 : i32
    scf.if %62 {
      %c0_46 = arith.constant 0 : index
      %c0_47 = arith.constant 0 : index
      %63 = vector.load %arg15[%c0_46, %c0_47] : memref<8x32xf32, #tpu.memory_space<vmem>>, vector<8x32xf32>
      %c0_48 = arith.constant 0 : index
      %c0_49 = arith.constant 0 : index
      %64 = vector.load %arg10[%c0_48, %c0_49] : memref<1x32xf32, #tpu.memory_space<vmem>>, vector<1x32xf32>
      %65 = vector.broadcast %64 : vector<1x32xf32> to vector<8x32xf32>
      %66 = arith.addf %63, %65 : vector<8x32xf32>
      %c0_50 = arith.constant 0 : index
      %c0_51 = arith.constant 0 : index
      %c0_52 = arith.constant 0 : index
      %67 = vector.load %arg11[%c0_50, %c0_51, %c0_52] : memref<1x8x32xf32, #tpu.memory_space<vmem>>, vector<1x8x32xf32>
      %68 = vector.shape_cast %67 : vector<1x8x32xf32> to vector<8x32xf32>
      %69 = vector.shape_cast %66 : vector<8x32xf32> to vector<1x8x32xf32>
      tpu.vector_store %arg11[%c0_50, %c0_51, %c0_52], %69 {strides = array<i32>} : memref<1x8x32xf32, #tpu.memory_space<vmem>>, vector<1x8x32xf32>,
    } else {
    }
    return
  }
  func.func @transform_0(%arg0: i32, %arg1: i32) -> (i32, i32, i32) {
    %c0_i32 = arith.constant 0 : i32
    %c0_i32_0 = arith.constant 0 : i32
    %c0_i32_1 = arith.constant 0 : i32
    return %arg0, %c0_i32, %c0_i32_0 : i32, i32, i32
  }
  func.func @transform_1(%arg0: i32, %arg1: i32) -> (i32, i32, i32) {
    %c0_i32 = arith.constant 0 : i32
    %c0_i32_0 = arith.constant 0 : i32
    %c0_i32_1 = arith.constant 0 : i32
    return %arg1, %c0_i32, %c0_i32_0 : i32, i32, i32
  }
  func.func @transform_2(%arg0: i32, %arg1: i32) -> (i32, i32, i32) {
    %c0_i32 = arith.constant 0 : i32
    %c0_i32_0 = arith.constant 0 : i32
    %c0_i32_1 = arith.constant 0 : i32
    return %arg1, %c0_i32, %c0_i32_0 : i32, i32, i32
  }
  func.func @transform_3(%arg0: i32, %arg1: i32) -> (i32, i32, i32) {
    %c0_i32 = arith.constant 0 : i32
    %c0_i32_0 = arith.constant 0 : i32
    %c0_i32_1 = arith.constant 0 : i32
    return %arg1, %c0_i32, %c0_i32_0 : i32, i32, i32
  }
  func.func @transform_4(%arg0: i32, %arg1: i32) -> (i32, i32, i32) {
    %c0_i32 = arith.constant 0 : i32
    %c0_i32_0 = arith.constant 0 : i32
    %c0_i32_1 = arith.constant 0 : i32
    return %arg1, %c0_i32, %c0_i32_0 : i32, i32, i32
  }
  func.func @transform_5(%arg0: i32, %arg1: i32) -> (i32, i32, i32) {
    %c0_i32 = arith.constant 0 : i32
    %c0_i32_0 = arith.constant 0 : i32
    %c0_i32_1 = arith.constant 0 : i32
    return %arg1, %c0_i32, %c0_i32_0 : i32, i32, i32
  }
  func.func @transform_6(%arg0: i32, %arg1: i32) -> (i32, i32, i32) {
    %c0_i32 = arith.constant 0 : i32
    %c0_i32_0 = arith.constant 0 : i32
    %c0_i32_1 = arith.constant 0 : i32
    return %arg1, %c0_i32, %c0_i32_0 : i32, i32, i32
  }
  func.func @transform_7(%arg0: i32, %arg1: i32) -> (i32, i32, i32) {
    %c0_i32 = arith.constant 0 : i32
    %c0_i32_0 = arith.constant 0 : i32
    %c0_i32_1 = arith.constant 0 : i32
    return %arg1, %c0_i32, %c0_i32_0 : i32, i32, i32
  }
  func.func @transform_8(%arg0: i32, %arg1: i32) -> (i32, i32) {
    %c0_i32 = arith.constant 0 : i32
    %c0_i32_0 = arith.constant 0 : i32
    %c0_i32_1 = arith.constant 0 : i32
    return %c0_i32, %c0_i32_0 : i32, i32
  }
  func.func @transform_9(%arg0: i32, %arg1: i32) -> (i32, i32, i32) {
    %c0_i32 = arith.constant 0 : i32
    %c0_i32_0 = arith.constant 0 : i32
    %c0_i32_1 = arith.constant 0 : i32
    return %arg0, %c0_i32, %c0_i32_0 : i32, i32, i32
  }
}

</mosaic_0001>

<bundles_post_ra>
// kernel: tpu_custom_call.1
= control target key start
LH: loop header
LB: loop body
LE: loop exit
PB: predicated region body
PF: predicated region fallthrough
CT: control target
= control target key end

     0   :  { %s1657_s0 = inlined_call_operand.vmem [shape: bf16[2,8,32], index: 0, kind: input, shape index: {}]   ;;  %s1658_s1 = inlined_call_operand.vmem [shape: bf16[4,32,128], index: 1, kind: input, shape index: {}]   ;;  %s1659_s2 = inlined_call_operand.vmem [shape: f32[4,1,128], index: 2, kind: input, shape index: {}]   ;;  %s1660_s3 = inlined_call_operand.vmem [shape: bf16[4,32,128], index: 3, kind: input, shape index: {}]   ;;  %s1661_s4 = inlined_call_operand.vmem [shape: f32[4,1,128], index: 4, kind: input, shape index: {}]   ;;  %s1662_s5 = inlined_call_operand.vmem [shape: bf16[4,32,128], index: 5, kind: input, shape index: {}]   ;;  %s1663_s6 = inlined_call_operand.vmem [shape: f32[4,1,128], index: 6, kind: input, shape index: {}]   ;;  %s1664_s7 = inlined_call_operand.vmem [shape: bf16[4,128,32], index: 7, kind: input, shape index: {}]   ;;  %s1665_s8 = inlined_call_operand.vmem [shape: f32[1,32], index: 8, kind: input, shape index: {}]   ;;  %s1666_s9 = inlined_call_operand.hbm [shape: f32[2,8,32], index: 9, kind: output, shape index: {}]  }
   0x1   :  { %1680 = sst [smem:[#allocation20_spill]] %s1657_s0 }
   0x2   :  { %1681 = sst [smem:[#allocation21_spill]] %s1666_s9 }
   0x3   :  { %14 = vsyncpa [#allocation7], 0 }
   0x4   :  { %16 = vsyncpa [#allocation7 + $0x1], 0  ;;  %s1420_s30 = smov 0   ;;  %s1422_s10 = smov 0  }
   0x5   :  { %s1424_s11 = smov 0   ;;  %s1426_s12 = smov 0  }
   0x6   :  { %s1428_s13 = smov 0   ;;  %s1430_s14 = smov 0  }
   0x7   :  { %s1432_s15 = smov 0   ;;  %s1434_s16 = smov 0  }
   0x8 LB: > { %1682 = sst [smem:[#allocation9_spill]] %s1336_s30  ;;  %s1053_s17 = sadd.s32 4294967295, %s1364_s16   ;;  %s1364_s16 = sphi %s1434_s16, %s22_s16   ;;  %s1360_s15 = sphi %s1432_s15, %s1711_s15   ;;  %s1356_s14 = sphi %s1430_s14, %s1710_s14   ;;  %s1352_s13 = sphi %s1428_s13, %s1709_s13   ;;  %s1348_s12 = sphi %s1426_s12, %s1708_s12   ;;  %s1344_s11 = sphi %s1424_s11, %s1707_s11   ;;  %s1340_s10 = sphi %s1422_s10, %s1706_s10   ;;  %s1336_s30 = sphi %s1420_s30, %s1705_s30  }
   0x9   : > { %1683 = sst [smem:[#allocation10_spill]] %s1340_s10  ;;  %s1054_s18 = sadd.s32 4294967294, %s1364_s16  }
   0xa   : > { %1684 = sst [smem:[#allocation11_spill]] %s1344_s11  ;;  %s31_s19 = sadd.s32 1, %s1356_s14 }
   0xb   : > { %1685 = sst [smem:[#allocation12_spill]] %s1356_s14  ;;  %p32_p0 = scmp.ge.s32.totalorder %s31_s19, 4 }
   0xc   : > { %1686 = sst [smem:[#allocation13_spill]] %s1360_s15  ;;  %s34_s20 = sadd.s32 1, %s1360_s15 }
   0xd   : > { %1687 = sst [smem:[#allocation14_spill]] %s1364_s16  ;;  %p280_p1 = scmp.ne.s32.totalorder %s1344_s11, %s1340_s10 }
   0xe   : > { %p281_p2 = scmp.eq.s32.totalorder %s1053_s17, 7  ;;  %s1713_s19 = smov (%p32_p0, %s31_s19), 0 }
   0xf   : > { %1688 = sst [smem:[#allocation15_spill]] %s1713_s19  ;;  %s1715_s20 = smov (!%p32_p0, %s34_s20), %s1360_s15 }
  0x10   : > { %p1469_p3 = por %p281_p2, %p280_p1  ;;  %p286_p4 = scmp.ne.s32.totalorder %s1340_s10, %s1336_s30 }
  0x11   : > { %p36_p5 = scmp.ge.s32.totalorder %s1715_s20, 2  ;;  %p287_p6 = scmp.eq.s32.totalorder %s1054_s18, 7 }
  0x12   : > { %s1689_s21 = scalar_select %p1469_p3, 1, 0 }
  0x13   : > { %p1057_p7 = scmp.ge.s32.totalorder %s1364_s16, 1  ;;  %p365_p8 = scmp.lt.s32.totalorder %s1364_s16, 9 }
  0x14   : > { %1690 = sst [smem:[#allocation16_spill]] %s1689_s21  ;;  %s1717_s20 = smov (%p36_p5, %s1715_s20), 0 }
  0x15   : > { %1691 = sst [smem:[#allocation17_spill]] %s1717_s20  ;;  %p1479_p9 = por %p287_p6, %p286_p4 }
  0x16   : > { %p366_p10 = pnand %p1057_p7, %p365_p8  ;;  %s267_s23 = ssub.s32 %s1360_s15, %s1717_s20 }
  0x17   : > { %s1692_s22 = scalar_select %p1479_p9, 1, 0 }
  0x18   : > { %s270_s24 = sadd.s32 1, %s1344_s11  ;;  %p268_p11 = scmp.eq.s32.totalorder %s267_s23, 0 }
  0x19   : > { %1693 = sst [smem:[#allocation18_spill]] %s1692_s22  ;;  %369 = sbr.rel (%p366_p10) target bundleno = 1128 (0x468), region = 56 }
  0x1a   : > { %s1487_s25 = scalar_select %p268_p11, %s1344_s11, %s270_s24  }
  0x1b   : > { %s1669_s26 = sand.u32 (!%p366_p10), 1, %s1340_s10   ;;  %p429_p12 = scmp.lt.s32.totalorder (!%p366_p10), %s1352_s13, 1 }
  0x1c   : > { %1694 = sst [smem:[#allocation19_spill]] %s1487_s25  ;;  %s1493_s27 = sshll.u32 (!%p366_p10), %s1669_s26, 3 }
  0x1d   : > { %p433_p13 = scmp.lt.s32.totalorder (!%p366_p10), %s1348_s12, 3  ;;  %s1695_s0 = sld [smem:[#allocation20_spill]] (!%p366_p10) }
  0x1e   : > { %s428_s30 = scalar_lea.vmem (!%p366_p10), [#allocation6], %s1493_s27  ;;  %p1068_p0 = scmp.ne.s32.totalorder (!%p366_p10), %s1348_s12, 0 }
  0x20   : > { %s430_s28 = scalar_select %p429_p12, %s1352_s13, 1 }
  0x21   : > { %s1498_s29 = scalar_select %p433_p13, %s1348_s12, 3 }
  0x22   : > { %s1059_s17 = sshll.u32 %s430_s28, 2  ;;  %466 = sbr.rel (%p1068_p0) target bundleno = 41 (0x29), region = 60  ;;  %vm467_vm0 = vcmask (!%p1068_p0), 261120   ;;  %v1366_v0 = vmov (!%p1068_p0), 0.0  }
  0x23   : > { %s432_s24 = scalar_lea.vmem %s1695_s0, %s1059_s17  ;;  %s1096_s20 = sshll.u32 %s1498_s29, 4  ;;  %468 = vst.msk [vmem:[#allocation5] sm:$0xff] (!%p1068_p0), %vm467_vm0, %v1366_v0 }
  0x24   : > { %s437_s26 = scalar_lea.vmem %s1658_s1, %s1096_s20  ;;  %s445_s16 = scalar_lea.vmem %s1660_s3, %s1096_s20 }
  0x25   : > { %s448_s28 = scalar_lea.vmem %s1661_s4, %s1498_s29  ;;  %s1521_s17 = scalar_lea.vmem %s1662_s5, %s1096_s20 }
  0x26   : > { %s456_s19 = scalar_lea.vmem %s1663_s6, %s1498_s29  ;;  %s1099_s0 = sshll.u32 %s1498_s29, 6 }
  0x27   : > { %s1531_s11 = scalar_lea.vmem %s1664_s7, %s1099_s0 }
  0x29 PF: > { %v1252_v1 = vld [vmem:[%s437_s26] sm:$0xff]   ;;  %v1367_v2 = vmov 0.0   ;;  %v1253_v3 = vld [vmem:[%s437_s26 + $0x8] sm:$0xff]   ;;  %vm1368_vm1 = vmmov 0   ;;  %vm493_vm2 = vcmask 261120   ;;  %s1696_s10 = scalar_lea.vmem %s1659_s2, %s1498_s29  ;;  %vm728_vm3 = vcmask 64512  }
  0x2a   : > { %1122 = vmatprep.subr.bf16.mxu0 %v1367_v2  ;;  %1146 = vmatprep.subr.bf16.mxu1 %v1367_v2  ;;  %v469_v4 = vld [vmem:[%s432_s24] sm:$0xf]  ;;  %v1255_v6 = vld [vmem:[%s445_s16 + $0x8] sm:$0xff]   ;;  %vm742_vm4 = vcmask 1043456   ;;  %v1260_v47 = vld [vmem:[%s1531_s11 + $0x10] sm:$0xff]   ;;  %p1090_p1 = scmp.ne.s32.totalorder %s1348_s12, 3 }
  0x2b   : > { %1123 = vmatpush3.bf16.msra.mxu0 %v1252_v1  ;;  %1126 = vmatprep.mubr.msk.bf16.mxu0 %vm1368_vm1, %v1367_v2  ;;  %v1254_v5 = vld [vmem:[%s445_s16] sm:$0xff]   ;;  %v1257_v8 = vld [vmem:[%s1521_s17 + $0x8] sm:$0xff]   ;;  %v1261_v48 = vld [vmem:[%s1531_s11 + $0x18] sm:$0xff]  }
  0x2c   : > { %1124 = vmatprep.subr.bf16.mxu0 %v1367_v2  ;;  %1148 = vmatprep.mubr.msk.bf16.mxu1 %vm1368_vm1, %v1367_v2  ;;  %v1256_v7 = vld [vmem:[%s1521_s17] sm:$0xff]   ;;  %v1259_v46 = vld [vmem:[%s1531_s11 + $0x8] sm:$0xff]   ;;  %v1264_v51 = vld [vmem:[%s1531_s11 + $0x30] sm:$0xff]  }
  0x2d   : > { %v1069_v9 = vld [vmem:[%s1696_s10] ss:$0 sm:$0xff]  ;;  %v1263_v50 = vld [vmem:[%s1531_s11 + $0x28] sm:$0xff]   ;;  %v1265_v52 = vld [vmem:[%s1531_s11 + $0x38] sm:$0xff]  }
  0x2e   : > { %v1073_v16 = vld [vmem:[%s448_s28] ss:$0 sm:$0xff]  ;;  %v877_v61 = vld [vmem:[#allocation5] sm:$0xff] }
  0x2f   : > { %1125 = vmatpush3.bf16.msra.mxu0 %v1253_v3  ;;  %v1077_v25 = vld [vmem:[%s456_s19] ss:$0 sm:$0xff] }
  0x30   : > { %1130 = vmatprep.subr.bf16.mxu0 %v1367_v2  ;;  %v1258_v45 = vld [vmem:[%s1531_s11] sm:$0xff]  }
  0x31   : > { %v1262_v49 = vld [vmem:[%s1531_s11 + $0x20] sm:$0xff]  }
  0x32   : > { %1127 = vmatmul.mubr.msk.bf16.vlgmr.msra.gmra.mrb[0].mxu0 %vm493_vm2, %v469_v4 }
  0x33   : > { %1131 = vmatpush3.bf16.msra.mxu0 %v1254_v5  ;;  %1134 = vmatprep.mubr.msk.bf16.mxu0 %vm1368_vm1, %v1367_v2 }
  0x34   : > { %1132 = vmatprep.subr.bf16.mxu0 %v1367_v2 }
  0x37   : > { %1133 = vmatpush3.bf16.msra.mxu0 %v1255_v6 }
  0x38   : > { %1138 = vmatprep.subr.bf16.mxu0 %v1367_v2 }
  0x3a   : > { %1135 = vmatmul.mubr.msk.bf16.vlgmr.msra.gmra.mrb[4].mxu0 %vm493_vm2, %v469_v4 }
  0x3b   : > { %1142 = vmatprep.mubr.msk.bf16.mxu0 %vm1368_vm1, %v1367_v2  ;;  %1139 = vmatpush3.bf16.msra.mxu0 %v1256_v7 }
  0x3c   : > { %1140 = vmatprep.subr.bf16.mxu0 %v1367_v2 }
  0x3f   : > { %1141 = vmatpush3.bf16.msra.mxu0 %v1257_v8 }
  0x40   : > { %1152 = vmatprep.subr.bf16.mxu0 %v1367_v2 }
  0x42   : > { %1143 = vmatmul.mubr.msk.bf16.vlgmr.msra.gmra.mrb[8].mxu0 %vm493_vm2, %v469_v4  ;;  %v1091_v4 = vld [vmem:[%s1665_s8] ss:$0 sm:$0xff] (!%p1090_p1) }
  0x43   : > { %1154 = vmatprep.mubr.msk.bf16.mxu0 %vm1368_vm1, %v1367_v2 }
 0x105   : > { %v531_v10 = vpop.f32.mrb[0].mxu0 }
 0x106   : > { %v532_v11 = vadd.f32 %v1069_v9, %v531_v10  ;;  %v1128_v12 = vpop.f32.mrb[1].mxu0 }
 0x107   : > { %v534_v13 = vpop.f32.mrb[2].mxu0 }
 0x108   : > { %v537_v14 = vpack.c.bf16 %v532_v11, %v532_v11  ;;  %v1129_v15 = vpop.f32.mrb[3].mxu0 }
 0x10a   : > { %538 = vst [vmem:[#allocation2] sm:$0xf] %v537_v14 }
 0x10d   : > { %v596_v17 = vpop.f32.mrb[4].mxu0 }
 0x10e   : > { %v597_v18 = vadd.f32 %v1073_v16, %v596_v17  ;;  %v1136_v19 = vpop.f32.mrb[5].mxu0 }
 0x10f   : > { %v599_v20 = vpop.f32.mrb[6].mxu0 }
 0x110   : > { %v602_v21 = vpack.c.bf16 %v597_v18, %v597_v18  ;;  %v1137_v22 = vpop.f32.mrb[7].mxu0 }
 0x111   : > { %v685_v24 = vld [vmem:[#allocation2] sm:$0xf] }
 0x112   : > { %603 = vst [vmem:[#allocation3] sm:$0xf] %v602_v21 }
 0x115   : > { %v661_v26 = vpop.f32.mrb[8].mxu0 }
 0x116   : > { %v662_v27 = vadd.f32 %v1077_v25, %v661_v26  ;;  %v1144_v28 = vpop.f32.mrb[9].mxu0 }
 0x117   : > { %v664_v29 = vpop.f32.mrb[10].mxu0 }
 0x118   : > { %v667_v30 = vpack.c.bf16 %v662_v27, %v662_v27  ;;  %v1145_v31 = vpop.f32.mrb[11].mxu0 }
 0x119   : > { %v686_v23 = vld [vmem:[#allocation3] sm:$0xf] }
 0x11a   : > { %1147 = vmatpush3.bf16.xpose.msra.mxu1 %v686_v23  ;;  %668 = vst [vmem:[#allocation4] sm:$0xf] %v667_v30 }
 0x11b   : > { %1158 = vmatprep.subr.bf16.mxu1 %v1367_v2 }
 0x121   : > { %1149 = vmatmul.mubr.bf16.vlgmr.msra.gmra.mrb[0].mxu1 %v685_v24  ;;  %v687_v37 = vld [vmem:[#allocation4] sm:$0xf] }
 0x122   : > { %1174 = vmatprep.mubr.msk.bf16.mxu1 %vm1368_vm1, %v1367_v2  ;;  %v744_v38 = vsel %vm742_vm4, %v687_v37, 0  ;;  %1159 = vmatpush3.bf16.msra.mxu1 %v1258_v45 }
 0x123   : > { %1153 = vmatpush3.bf16.msra.mxu0 %v744_v38  ;;  %1160 = vmatprep.subr.bf16.mxu1 %v1367_v2 }
 0x126   : > { %1161 = vmatpush3.bf16.msra.mxu1 %v1259_v46 }
 0x127   : > { %1162 = vmatprep.subr.bf16.mxu1 %v1367_v2 }
 0x12a   : > { %1163 = vmatpush3.bf16.msra.mxu1 %v1260_v47 }
 0x12b   : > { %1164 = vmatprep.subr.bf16.mxu1 %v1367_v2 }
 0x12e   : > { %1165 = vmatpush3.bf16.msra.mxu1 %v1261_v48 }
 0x12f   : > { %1166 = vmatprep.subr.bf16.mxu1 %v1367_v2 }
 0x132   : > { %1167 = vmatpush3.bf16.msra.mxu1 %v1262_v49 }
 0x133   : > { %1168 = vmatprep.subr.bf16.mxu1 %v1367_v2 }
 0x136   : > { %1169 = vmatpush3.bf16.msra.mxu1 %v1263_v50 }
 0x137   : > { %1170 = vmatprep.subr.bf16.mxu1 %v1367_v2 }
 0x13a   : > { %1171 = vmatpush3.bf16.msra.mxu1 %v1264_v51 }
 0x13b   : > { %1172 = vmatprep.subr.bf16.mxu1 %v1367_v2 }
 0x13e   : > { %1173 = vmatpush3.bf16.msra.mxu1 %v1265_v52 }
 0x1f4   : > { %v722_v32 = vpop.f32.mrb[0].mxu1 }
 0x1f5   : > { %v1150_v33 = vpop.f32.mrb[1].mxu1  ;;  %v729_v34 = vsel %vm728_vm3, %v722_v32, -inf }
 0x1f6   : > { %730 = vmax.xlane.f32.xlu0 %v729_v34  ;;  %v725_v35 = vpop.f32.mrb[2].mxu1 }
 0x1f7   : > { %v1151_v36 = vpop.f32.mrb[3].mxu1 }
 0x283   : > { %v731_v39 = vpop.xlane.xlu0 %730 }
 0x284   : > { %v732_v40 = vsub.f32 %v722_v32, %v731_v39 }
 0x286   : > { %v733_v41 = vmul.f32 1.442695, %v732_v40 }
 0x288   : > { %1266 = vpow2.f32 %v733_v41 }
 0x292   : > { %v1267_v42 = vpop.eup %1266 }
 0x293   : > { %v735_v43 = vsel %vm728_vm3, %v1267_v42, 0.0  ;;  %v738_v44 = vpack.c.bf16 %v1267_v42, %v1267_v42 }
 0x294   : > { %736 = vadd.xlane.f32.xlu0 %v735_v43 }
 0x295   : > { %1155 = vmatmul.mubr.msk.bf16.vlgmr.msra.gmra.mrb[12].mxu0 %vm728_vm3, %v738_v44 }
 0x321   : > { %v737_v53 = vpop.xlane.xlu0 %736 }
 0x322   : > { %1268 = vrcp.f32 %v737_v53 }
 0x32c   : > { %v1269_v54 = vpop.eup %1268 }
 0x368   : > { %v780_v55 = vpop.f32.mrb[12].mxu0 }
 0x369   : > { %v787_v56 = vmul.f32 %v1269_v54, %v780_v55  ;;  %v1156_v57 = vpop.f32.mrb[13].mxu0 }
 0x36a   : > { %v783_v58 = vpop.f32.mrb[14].mxu0 }
 0x36b   : > { %v788_v59 = vpack.c.bf16 %v787_v56, %v787_v56  ;;  %v1157_v60 = vpop.f32.mrb[15].mxu0 }
 0x36d   : > { %1175 = vmatmul.mubr.bf16.vlgmr.msra.gmra.mrb[4].mxu1 %v788_v59 }
 0x43d   : > { %883 = sbr.rel (%p1090_p1) target bundleno = 1102 (0x44e), region = 64 }
 0x440   : > { %v871_v62 = vpop.f32.mrb[4].mxu1 }
 0x441   : > { %v878_v63 = vadd.f32 %v877_v61, %v871_v62  ;;  %v1176_v0 = vpop.f32.mrb[5].mxu1 }
 0x442   : > { %v874_v1 = vpop.f32.mrb[6].mxu1 }
 0x443   : > { %879 = vst.msk [vmem:[#allocation5] sm:$0xff] %vm493_vm2, %v878_v63  ;;  %v1177_v2 = vpop.f32.mrb[7].mxu1 }
 0x44a   : > { %v884_v3 = vld [vmem:[#allocation5] sm:$0xff] }
 0x44b   : > { %v892_v5 = vadd.f32 %v1091_v4, %v884_v3 }
 0x44d   : > { %893 = vst.msk [vmem:[%s428_s30] sm:$0xff] %vm493_vm2, %v892_v5 }
 0x44e PF: > { %s1697_s29 = sld [smem:[#allocation10_spill]]  ;;  %s1093_s28 = sshll.u32 %s1352_s13, 7 }
 0x44f   : > { %s1699_s12 = sld [smem:[#allocation21_spill]]  ;;  %s908_s19 = sshll.u32 %s428_s30, 4  ;;  %s909_s19 = int_to_ptr.vmem [resolvable:$true] %s908_s19 }
 0x450   : > { %s1270_s0 = scalar_lea.vmem %s909_s19, 128  ;;  %s1369_s9 = smov [#allocation6]  }
 0x451   : > { %p1271_p2 = scmp.ne.s32.totalorder %s909_s19, %s1270_s0  ;;  %s1274_s10 = sshll.u32 %s1369_s9, 4  ;;  %s1275_s10 = int_to_ptr.vmem [resolvable:$false] %s1274_s10 }
 0x452   : > { %s1276_s16 = scalar_lea.vmem %s1275_s10, 256  ;;  %p1277_p6 = scmp.lt.s32.totalorder %s909_s19, %s1275_s10 }
 0x453   : > { %p1272_p4 = pnand %p1271_p2, %p1469_p3  ;;  %p1278_p7 = scmp.lt.s32.totalorder %s1276_s16, %s1270_s0 }
 0x454   : > { %s1701_s14 = sand.u32 1, %s1697_s29  }
 0x455   : > { %s1700_s23 = smov %s1699_s12  ;;  %s1606_s15 = scalar_lea.hbm %s1699_s12, %s1093_s28 }
 0x456   : > { %s895_s25 = scalar_lea.sflag [#allocation7], %s1701_s14  ;;  %p1273_p5 = pneg %p1272_p4 }
 0x457   : > { %p1279_p8 = por %p1278_p7, %p1277_p6 }
 0x459   : > { %p1280_p10 = pnand %p1279_p8, %p1273_p5 }
 0x45b   : > { %1283 = shalt.err (!%p1280_p10)
}
 0x45c   : > { %s1284_s13 = scalar_lea.hbm %s1606_s15, 128  ;;  %s1288_s20 = scalar_lea.hbm %s1700_s23, 256 }
 0x45d   : > { %p1285_p11 = scmp.ne.s32.totalorder %s1606_s15, %s1284_s13  ;;  %p1289_p0 = scmp.lt.u32.totalorder %s1606_s15, %s1700_s23 }
 0x45e   : > { %p1290_p1 = scmp.lt.u32.totalorder %s1288_s20, %s1284_s13  ;;  %p1292_p4 = scmp.lt.u32.totalorder %s1284_s13, %s1606_s15 }
 0x45f   : > { %p1286_p12 = pnand %p1285_p11, %p1469_p3 }
 0x460   : > { %p1291_p2 = por %p1290_p1, %p1289_p0 }
 0x461   : > { %p1287_p13 = pneg %p1286_p12 }
 0x462   : > { %p1293_p5 = por %p1292_p4, %p1291_p2 }
 0x464   : > { %p1294_p6 = pnand %p1293_p5, %p1287_p13 }
 0x466   : > { %1297 = shalt.err (!%p1294_p6)
}
 0x467   : > { %1178 = dma.vmem_to_hbm [thread:$0]  (%p1469_p3), %s909_s19, 128, %s1606_s15, %s895_s25  }
 0x468 PF: > { %s1702_s11 = sld [smem:[#allocation14_spill]]  ;;  %s1703_s26 = sld [smem:[#allocation9_spill]] }
 0x46e   : > { %p1184_p7 = scmp.ge.s32.totalorder %s1702_s11, 2  ;;  %s920_s28 = sand.u32 1, %s1703_s26  }
 0x46f   : > { %s921_s18 = scalar_lea.sflag [#allocation7], %s920_s28 }
 0x470   : > { %p1181_p8 = pnand %p1184_p7, %p1479_p9 }
 0x472   : > { %1331 = dma.done.wait (!%p1181_p8), %s921_s18, 128  }
 0x473   : > { %1333 = vsyncadd (!%p1181_p8), %s921_s18, 4294967168  ;;  %s22_s16 = sadd.s32 1, %s1702_s11   ;;  %s1705_s30 = sld [smem:[#allocation10_spill]] }
 0x474   : > { %p19_p10 = scmp.ge.s32.totalorder %s22_s16, 10   ;;  %s1706_s10 = sld [smem:[#allocation11_spill]] }
 0x475   : > { %s1707_s11 = sld [smem:[#allocation19_spill]]  ;;  %s1708_s12 = sld [smem:[#allocation12_spill]] }
 0x476   : > { %s1709_s13 = sld [smem:[#allocation13_spill]]  ;;  %s1710_s14 = sld [smem:[#allocation15_spill]] }
 0x477   : > { %s1711_s15 = sld [smem:[#allocation17_spill]]  ;;  %21 = sbr.rel (!%p19_p10) target bundleno = 8 (0x8), region = 120 }
 0x47e   :  { %926 = vsyncpa [#allocation7], 1 }
 0x47f   :  { %928 = vsyncpa [#allocation7 + $0x1], 1 }

</bundles_post_ra>
